<compile_context>
chip_gen: v7x
topology: tpu7x:2x2x1
jax: 0.10.0
libtpu: 0.0.40
codegen_flags: <defaults>
</compile_context>

<pallas_src>
import jax
import jax.numpy as jnp
from jax.experimental import pallas as pl
from jax.experimental.pallas import tpu as pltpu

_LANE = 128


def _sepconv_kernel(xw_ref, w_ref, shift_ref, o_ref):
    # xw_ref   : (1, 1, TH+2, W+2, Cin_p)  bf16  padded/windowed input tile
    # w_ref    : (9, Cin_p, Cout_p)        bf16  depthwise*pointwise*BN-scale
    # shift_ref: (1, Cout_p)               f32   folded bias*scale + BN shift
    # o_ref    : (1, TH, W, Cout_p)        f32
    TH = o_ref.shape[1]
    W = o_ref.shape[2]
    cout_p = o_ref.shape[3]
    cin_p = xw_ref.shape[4]

    xw = xw_ref[0, 0]                                  # (TH+2, W+2, Cin_p) bf16

    acc = None
    for di in range(3):
        for dj in range(3):
            # Shifted tap slab; reshape merges only leading dims (Cin_p = 128
            # lanes, W multiple of 8 sublanes) so it is layout-preserving.
            lhs = xw[di:di + TH, dj:dj + W, :].reshape(TH * W, cin_p)
            part = jnp.dot(lhs, w_ref[di * 3 + dj],
                           preferred_element_type=jnp.float32)  # MXU, f32 acc
            acc = part if acc is None else acc + part

    y = acc + shift_ref[...]                           # single f32 epilogue add
    o_ref[...] = y.reshape(1, TH, W, cout_p).astype(o_ref.dtype)


def _round_up(x, m):
    return (x + m - 1) // m * m


def _pick_tile_h(H, W, cin_p, cout_p, budget_bytes=16 * 1024 * 1024):
    """Largest divisor of H whose double-buffered tiles fit the VMEM budget."""
    weights = 9 * cin_p * cout_p * 2 + cout_p * 4
    best = 1
    for th in range(1, H + 1):
        if H % th != 0:
            continue
        tile = (2 * (th + 2) * (W + 2) * cin_p * 2      # bf16 input, 2 buffers
                + 2 * th * W * cout_p * 4)              # f32 output, 2 buffers
        if weights + tile <= budget_bytes:
            best = th
    return best


def separable_conv_block(x_nchw, dw_w, pw_w, pw_b, bn_gamma, bn_beta,
                         bn_mean, bn_var, eps=1e-3, tile_h=None):
    """x_nchw: (N, Cin, H, W) f32.  dw_w: (3,3,Cin)  pw_w: (Cin,Cout).
    Returns (N, Cout, H, W) f32 (depthwise -> pointwise -> BatchNorm, eval)."""
    N, Cin, H, W = x_nchw.shape
    Cout = pw_w.shape[1]
    cin_p = _round_up(Cin, _LANE)
    cout_p = _round_up(Cout, _LANE)

    # ---- Fold BatchNorm (inference) + pointwise bias + depthwise taps ----
    scale = bn_gamma / jnp.sqrt(bn_var + eps)                      # (Cout,)
    shift = pw_b * scale + (bn_beta - bn_mean * scale)             # (Cout,)
    pw_fold = pw_w * scale[None, :]                                # (Cin, Cout)
    w_eff = dw_w.reshape(9, Cin)[:, :, None] * pw_fold[None, :, :] # (9,Cin,Cout)
    # Zero-pad channels so padded lanes contribute nothing.
    w_eff = jnp.pad(w_eff, ((0, 0), (0, cin_p - Cin), (0, cout_p - Cout)))
    w_eff = w_eff.astype(jnp.bfloat16)
    shift_p = jnp.pad(shift, (0, cout_p - Cout)).reshape(1, cout_p)
    shift_p = shift_p.astype(jnp.float32)

    # ---- Input: NCHW -> NHWC, spatial halo pad, channel pad, bf16 ----
    x = jnp.transpose(x_nchw, (0, 2, 3, 1))
    xp = jnp.pad(x, ((0, 0), (1, 1), (1, 1), (0, cin_p - Cin)))
    xp = xp.astype(jnp.bfloat16)                       # (N, H+2, W+2, Cin_p)

    # ---- H tiling with 2-row halo windows ----
    th = _pick_tile_h(H, W, cin_p, cout_p) if tile_h is None else tile_h
    assert H % th == 0, "tile_h must divide H"
    nh = H // th
    if nh == 1:
        x_win = xp[:, None]                            # (N, 1, H+2, W+2, Cin_p)
    else:
        x_win = jnp.stack([xp[:, h * th:h * th + th + 2] for h in range(nh)],
                          axis=1)                      # (N, nh, TH+2, W+2, Cin_p)

    out = pl.pallas_call(
        _sepconv_kernel,
        out_shape=jax.ShapeDtypeStruct((N, H, W, cout_p), jnp.float32),
        grid_spec=pltpu.PrefetchScalarGridSpec(
            num_scalar_prefetch=0,
            grid=(N, nh),
            in_specs=[
                pl.BlockSpec((1, 1, th + 2, W + 2, cin_p),
                             lambda n, h: (n, h, 0, 0, 0)),
                pl.BlockSpec((9, cin_p, cout_p), lambda n, h: (0, 0, 0)),
                pl.BlockSpec((1, cout_p), lambda n, h: (0, 0)),
            ],
            out_specs=pl.BlockSpec((1, th, W, cout_p),
                                   lambda n, h: (n, h, 0, 0)),
        ),
        compiler_params=pltpu.CompilerParams(
            dimension_semantics=("parallel", "parallel"),
            vmem_limit_bytes=32 * 1024 * 1024),
    )(x_win, w_eff, shift_p)

    # Drop channel padding, NHWC -> NCHW.
    return jnp.transpose(out[..., :Cout], (0, 3, 1, 2))


def _reference(x_nchw, dw_w, pw_w, pw_b, bn_gamma, bn_beta, bn_mean, bn_var,
               eps=1e-3):
    """Plain-JAX f32 reference (same math) for the correctness check."""
    N, Cin, H, W = x_nchw.shape
    x = jnp.transpose(x_nchw, (0, 2, 3, 1))
    xp = jnp.pad(x, ((0, 0), (1, 1), (1, 1), (0, 0)))
    acc = jnp.zeros((N, H, W, Cin), jnp.float32)
    for di in range(3):
        for dj in range(3):
            acc = acc + xp[:, di:di + H, dj:dj + W, :] * dw_w[di, dj, :]
    y = jnp.einsum('nhwc,cd->nhwd', acc, pw_w) + pw_b
    scale = bn_gamma / jnp.sqrt(bn_var + eps)
    shift = bn_beta - bn_mean * scale
    y = y * scale + shift
    return jnp.transpose(y, (0, 3, 1, 2))


if __name__ == "__main__":
    key = jax.random.PRNGKey(0)
    k_x, k_dw, k_pw, k_pb, k_g, k_b, k_m, k_v = jax.random.split(key, 8)

    # Small shapes consistent with the module.
    N, Cin, H, W = 2, 4, 16, 16
    Cout = Cin  # out_channels defaults to in_channels

    x = jax.random.normal(k_x, (N, Cin, H, W), jnp.float32)

    # Depthwise conv weights: torch (Cin,1,3,3) -> stored (3,3,Cin).
    dw_w = 0.1 * jax.random.normal(k_dw, (3, 3, Cin), jnp.float32)
    # Pointwise conv weights: torch (Cout,Cin,1,1) -> stored (Cin,Cout).
    pw_w = 0.1 * jax.random.normal(k_pw, (Cin, Cout), jnp.float32)
    pw_b = 0.1 * jax.random.normal(k_pb, (Cout,), jnp.float32)

    # BatchNorm (inference-mode) parameters / running stats, eps=1e-3 (module spec).
    bn_gamma = 1.0 + 0.1 * jax.random.normal(k_g, (Cout,), jnp.float32)
    bn_beta = 0.1 * jax.random.normal(k_b, (Cout,), jnp.float32)
    bn_mean = 0.1 * jax.random.normal(k_m, (Cout,), jnp.float32)
    bn_var = jnp.abs(1.0 + 0.1 * jax.random.normal(k_v, (Cout,), jnp.float32))

    # tile_h=8 exercises the H-tiled (halo window) path: grid = (2, 2).
    out = separable_conv_block(x, dw_w, pw_w, pw_b,
                               bn_gamma, bn_beta, bn_mean, bn_var, tile_h=8)
    out = jax.block_until_ready(out)

    ref = _reference(x, dw_w, pw_w, pw_b, bn_gamma, bn_beta, bn_mean, bn_var)
    assert out.shape == (N, Cout, H, W)
    # bf16 matmul operands / f32 accumulation -> looser tolerance than pure f32.
    assert jnp.allclose(out, ref, atol=1e-2, rtol=1e-2), \
        float(jnp.max(jnp.abs(out - ref)))

    print("KERNEL_OK")
</pallas_src>

<mosaic_0001>
module attributes {stable_mosaic.version = 11 : i64} {
  func.func @_sepconv_kernel(%arg0: i32, %arg1: i32, %arg2: memref<1x1x10x18x128xbf16, #tpu.memory_space<vmem>>, %arg3: memref<9x128x128xbf16, #tpu.memory_space<vmem>>, %arg4: memref<1x128xf32, #tpu.memory_space<vmem>>, %arg5: memref<1x8x16x128xf32, #tpu.memory_space<vmem>>) attributes {dimension_semantics = [#tpu.dimension_semantics<parallel>, #tpu.dimension_semantics<parallel>], iteration_bounds = array<i64: 2, 2>, scalar_prefetch = 0 : i64, scratch_operands = 0 : i64, tpu.core_type = #tpu.core_type<tc>, window_params = [{transform_indices = @transform_0, window_bounds = array<i64: 1, 1, 10, 18, 128>}, {pipeline_mode = #tpu.pipeline_mode<synchronous>, transform_indices = @transform_1, window_bounds = array<i64: 9, 128, 128>}, {pipeline_mode = #tpu.pipeline_mode<synchronous>, transform_indices = @transform_2, window_bounds = array<i64: 1, 128>}, {transform_indices = @transform_3, window_bounds = array<i64: 1, 8, 16, 128>}]} {
    %c0 = arith.constant 0 : index
    %c0_0 = arith.constant 0 : index
    %c0_1 = arith.constant 0 : index
    %c0_2 = arith.constant 0 : index
    %c0_3 = arith.constant 0 : index
    %0 = vector.load %arg2[%c0, %c0_0, %c0_1, %c0_2, %c0_3] : memref<1x1x10x18x128xbf16, #tpu.memory_space<vmem>>, vector<1x1x10x18x128xbf16>
    %1 = vector.shape_cast %0 : vector<1x1x10x18x128xbf16> to vector<10x18x128xbf16>
    %2 = vector.extract_strided_slice %1 {offsets = [0, 0, 0], sizes = [8, 16, 128], strides = [1, 1, 1]} : vector<10x18x128xbf16> to vector<8x16x128xbf16>
    %3 = vector.shape_cast %2 : vector<8x16x128xbf16> to vector<128x128xbf16>
    %c0_4 = arith.constant 0 : index
    %c0_5 = arith.constant 0 : index
    %c0_6 = arith.constant 0 : index
    %4 = vector.load %arg3[%c0_4, %c0_5, %c0_6] : memref<9x128x128xbf16, #tpu.memory_space<vmem>>, vector<1x128x128xbf16>
    %5 = vector.shape_cast %4 : vector<1x128x128xbf16> to vector<128x128xbf16>
    %cst = arith.constant dense<0.000000e+00> : vector<128x128xf32>
    %6 = tpu.matmul %3, %5, %cst {dimension_numbers = #tpu.dot_dimension_numbers<[1], [0], [0], [1], [0, 0, 1, 1], [], []>} : vector<128x128xbf16>, vector<128x128xbf16>, vector<128x128xf32> -> vector<128x128xf32>
    %7 = vector.extract_strided_slice %1 {offsets = [0, 1, 0], sizes = [8, 16, 128], strides = [1, 1, 1]} : vector<10x18x128xbf16> to vector<8x16x128xbf16>
    %8 = vector.shape_cast %7 : vector<8x16x128xbf16> to vector<128x128xbf16>
    %c1 = arith.constant 1 : index
    %c0_7 = arith.constant 0 : index
    %c0_8 = arith.constant 0 : index
    %9 = vector.load %arg3[%c1, %c0_7, %c0_8] : memref<9x128x128xbf16, #tpu.memory_space<vmem>>, vector<1x128x128xbf16>
    %10 = vector.shape_cast %9 : vector<1x128x128xbf16> to vector<128x128xbf16>
    %cst_9 = arith.constant dense<0.000000e+00> : vector<128x128xf32>
    %11 = tpu.matmul %8, %10, %cst_9 {dimension_numbers = #tpu.dot_dimension_numbers<[1], [0], [0], [1], [0, 0, 1, 1], [], []>} : vector<128x128xbf16>, vector<128x128xbf16>, vector<128x128xf32> -> vector<128x128xf32>
    %12 = arith.addf %6, %11 : vector<128x128xf32>
    %13 = vector.extract_strided_slice %1 {offsets = [0, 2, 0], sizes = [8, 16, 128], strides = [1, 1, 1]} : vector<10x18x128xbf16> to vector<8x16x128xbf16>
    %14 = vector.shape_cast %13 : vector<8x16x128xbf16> to vector<128x128xbf16>
    %c2 = arith.constant 2 : index
    %c0_10 = arith.constant 0 : index
    %c0_11 = arith.constant 0 : index
    %15 = vector.load %arg3[%c2, %c0_10, %c0_11] : memref<9x128x128xbf16, #tpu.memory_space<vmem>>, vector<1x128x128xbf16>
    %16 = vector.shape_cast %15 : vector<1x128x128xbf16> to vector<128x128xbf16>
    %cst_12 = arith.constant dense<0.000000e+00> : vector<128x128xf32>
    %17 = tpu.matmul %14, %16, %cst_12 {dimension_numbers = #tpu.dot_dimension_numbers<[1], [0], [0], [1], [0, 0, 1, 1], [], []>} : vector<128x128xbf16>, vector<128x128xbf16>, vector<128x128xf32> -> vector<128x128xf32>
    %18 = arith.addf %12, %17 : vector<128x128xf32>
    %19 = vector.extract_strided_slice %1 {offsets = [1, 0, 0], sizes = [8, 16, 128], strides = [1, 1, 1]} : vector<10x18x128xbf16> to vector<8x16x128xbf16>
    %20 = vector.shape_cast %19 : vector<8x16x128xbf16> to vector<128x128xbf16>
    %c3 = arith.constant 3 : index
    %c0_13 = arith.constant 0 : index
    %c0_14 = arith.constant 0 : index
    %21 = vector.load %arg3[%c3, %c0_13, %c0_14] : memref<9x128x128xbf16, #tpu.memory_space<vmem>>, vector<1x128x128xbf16>
    %22 = vector.shape_cast %21 : vector<1x128x128xbf16> to vector<128x128xbf16>
    %cst_15 = arith.constant dense<0.000000e+00> : vector<128x128xf32>
    %23 = tpu.matmul %20, %22, %cst_15 {dimension_numbers = #tpu.dot_dimension_numbers<[1], [0], [0], [1], [0, 0, 1, 1], [], []>} : vector<128x128xbf16>, vector<128x128xbf16>, vector<128x128xf32> -> vector<128x128xf32>
    %24 = arith.addf %18, %23 : vector<128x128xf32>
    %25 = vector.extract_strided_slice %1 {offsets = [1, 1, 0], sizes = [8, 16, 128], strides = [1, 1, 1]} : vector<10x18x128xbf16> to vector<8x16x128xbf16>
    %26 = vector.shape_cast %25 : vector<8x16x128xbf16> to vector<128x128xbf16>
    %c4 = arith.constant 4 : index
    %c0_16 = arith.constant 0 : index
    %c0_17 = arith.constant 0 : index
    %27 = vector.load %arg3[%c4, %c0_16, %c0_17] : memref<9x128x128xbf16, #tpu.memory_space<vmem>>, vector<1x128x128xbf16>
    %28 = vector.shape_cast %27 : vector<1x128x128xbf16> to vector<128x128xbf16>
    %cst_18 = arith.constant dense<0.000000e+00> : vector<128x128xf32>
    %29 = tpu.matmul %26, %28, %cst_18 {dimension_numbers = #tpu.dot_dimension_numbers<[1], [0], [0], [1], [0, 0, 1, 1], [], []>} : vector<128x128xbf16>, vector<128x128xbf16>, vector<128x128xf32> -> vector<128x128xf32>
    %30 = arith.addf %24, %29 : vector<128x128xf32>
    %31 = vector.extract_strided_slice %1 {offsets = [1, 2, 0], sizes = [8, 16, 128], strides = [1, 1, 1]} : vector<10x18x128xbf16> to vector<8x16x128xbf16>
    %32 = vector.shape_cast %31 : vector<8x16x128xbf16> to vector<128x128xbf16>
    %c5 = arith.constant 5 : index
    %c0_19 = arith.constant 0 : index
    %c0_20 = arith.constant 0 : index
    %33 = vector.load %arg3[%c5, %c0_19, %c0_20] : memref<9x128x128xbf16, #tpu.memory_space<vmem>>, vector<1x128x128xbf16>
    %34 = vector.shape_cast %33 : vector<1x128x128xbf16> to vector<128x128xbf16>
    %cst_21 = arith.constant dense<0.000000e+00> : vector<128x128xf32>
    %35 = tpu.matmul %32, %34, %cst_21 {dimension_numbers = #tpu.dot_dimension_numbers<[1], [0], [0], [1], [0, 0, 1, 1], [], []>} : vector<128x128xbf16>, vector<128x128xbf16>, vector<128x128xf32> -> vector<128x128xf32>
    %36 = arith.addf %30, %35 : vector<128x128xf32>
    %37 = vector.extract_strided_slice %1 {offsets = [2, 0, 0], sizes = [8, 16, 128], strides = [1, 1, 1]} : vector<10x18x128xbf16> to vector<8x16x128xbf16>
    %38 = vector.shape_cast %37 : vector<8x16x128xbf16> to vector<128x128xbf16>
    %c6 = arith.constant 6 : index
    %c0_22 = arith.constant 0 : index
    %c0_23 = arith.constant 0 : index
    %39 = vector.load %arg3[%c6, %c0_22, %c0_23] : memref<9x128x128xbf16, #tpu.memory_space<vmem>>, vector<1x128x128xbf16>
    %40 = vector.shape_cast %39 : vector<1x128x128xbf16> to vector<128x128xbf16>
    %cst_24 = arith.constant dense<0.000000e+00> : vector<128x128xf32>
    %41 = tpu.matmul %38, %40, %cst_24 {dimension_numbers = #tpu.dot_dimension_numbers<[1], [0], [0], [1], [0, 0, 1, 1], [], []>} : vector<128x128xbf16>, vector<128x128xbf16>, vector<128x128xf32> -> vector<128x128xf32>
    %42 = arith.addf %36, %41 : vector<128x128xf32>
    %43 = vector.extract_strided_slice %1 {offsets = [2, 1, 0], sizes = [8, 16, 128], strides = [1, 1, 1]} : vector<10x18x128xbf16> to vector<8x16x128xbf16>
    %44 = vector.shape_cast %43 : vector<8x16x128xbf16> to vector<128x128xbf16>
    %c7 = arith.constant 7 : index
    %c0_25 = arith.constant 0 : index
    %c0_26 = arith.constant 0 : index
    %45 = vector.load %arg3[%c7, %c0_25, %c0_26] : memref<9x128x128xbf16, #tpu.memory_space<vmem>>, vector<1x128x128xbf16>
    %46 = vector.shape_cast %45 : vector<1x128x128xbf16> to vector<128x128xbf16>
    %cst_27 = arith.constant dense<0.000000e+00> : vector<128x128xf32>
    %47 = tpu.matmul %44, %46, %cst_27 {dimension_numbers = #tpu.dot_dimension_numbers<[1], [0], [0], [1], [0, 0, 1, 1], [], []>} : vector<128x128xbf16>, vector<128x128xbf16>, vector<128x128xf32> -> vector<128x128xf32>
    %48 = arith.addf %42, %47 : vector<128x128xf32>
    %49 = vector.extract_strided_slice %1 {offsets = [2, 2, 0], sizes = [8, 16, 128], strides = [1, 1, 1]} : vector<10x18x128xbf16> to vector<8x16x128xbf16>
    %50 = vector.shape_cast %49 : vector<8x16x128xbf16> to vector<128x128xbf16>
    %c8 = arith.constant 8 : index
    %c0_28 = arith.constant 0 : index
    %c0_29 = arith.constant 0 : index
    %51 = vector.load %arg3[%c8, %c0_28, %c0_29] : memref<9x128x128xbf16, #tpu.memory_space<vmem>>, vector<1x128x128xbf16>
    %52 = vector.shape_cast %51 : vector<1x128x128xbf16> to vector<128x128xbf16>
    %cst_30 = arith.constant dense<0.000000e+00> : vector<128x128xf32>
    %53 = tpu.matmul %50, %52, %cst_30 {dimension_numbers = #tpu.dot_dimension_numbers<[1], [0], [0], [1], [0, 0, 1, 1], [], []>} : vector<128x128xbf16>, vector<128x128xbf16>, vector<128x128xf32> -> vector<128x128xf32>
    %54 = arith.addf %48, %53 : vector<128x128xf32>
    %c0_31 = arith.constant 0 : index
    %c0_32 = arith.constant 0 : index
    %55 = vector.load %arg4[%c0_31, %c0_32] : memref<1x128xf32, #tpu.memory_space<vmem>>, vector<1x128xf32>
    %56 = vector.broadcast %55 : vector<1x128xf32> to vector<128x128xf32>
    %57 = arith.addf %54, %56 : vector<128x128xf32>
    %58 = vector.shape_cast %57 : vector<128x128xf32> to vector<1x8x16x128xf32>
    %c0_33 = arith.constant 0 : index
    %c0_34 = arith.constant 0 : index
    %c0_35 = arith.constant 0 : index
    %c0_36 = arith.constant 0 : index
    %59 = vector.load %arg5[%c0_33, %c0_34, %c0_35, %c0_36] : memref<1x8x16x128xf32, #tpu.memory_space<vmem>>, vector<1x8x16x128xf32>
    tpu.vector_store %arg5[%c0_33, %c0_34, %c0_35, %c0_36], %58 {strides = array<i32>} : memref<1x8x16x128xf32, #tpu.memory_space<vmem>>, vector<1x8x16x128xf32>,
    return
  }
  func.func @transform_0(%arg0: i32, %arg1: i32) -> (i32, i32, i32, i32, i32) {
    %c0_i32 = arith.constant 0 : i32
    %c0_i32_0 = arith.constant 0 : i32
    %c0_i32_1 = arith.constant 0 : i32
    %c0_i32_2 = arith.constant 0 : i32
    return %arg0, %arg1, %c0_i32, %c0_i32_0, %c0_i32_1 : i32, i32, i32, i32, i32
  }
  func.func @transform_1(%arg0: i32, %arg1: i32) -> (i32, i32, i32) {
    %c0_i32 = arith.constant 0 : i32
    %c0_i32_0 = arith.constant 0 : i32
    %c0_i32_1 = arith.constant 0 : i32
    %c0_i32_2 = arith.constant 0 : i32
    return %c0_i32, %c0_i32_0, %c0_i32_1 : i32, i32, i32
  }
  func.func @transform_2(%arg0: i32, %arg1: i32) -> (i32, i32) {
    %c0_i32 = arith.constant 0 : i32
    %c0_i32_0 = arith.constant 0 : i32
    %c0_i32_1 = arith.constant 0 : i32
    return %c0_i32, %c0_i32_0 : i32, i32
  }
  func.func @transform_3(%arg0: i32, %arg1: i32) -> (i32, i32, i32, i32) {
    %c0_i32 = arith.constant 0 : i32
    %c0_i32_0 = arith.constant 0 : i32
    %c0_i32_1 = arith.constant 0 : i32
    return %arg0, %arg1, %c0_i32, %c0_i32_0 : i32, i32, i32, i32
  }
}

</mosaic_0001>

<bundles_post_ra>
// kernel: tpu_custom_call.1
= control target key start
LH: loop header
LB: loop body
LE: loop exit
PB: predicated region body
PF: predicated region fallthrough
CT: control target
= control target key end

     0   :  { %8 = vsyncpa [#allocation3], 0  ;;  %s4315_s0 = inlined_call_operand.vmem [shape: bf16[2,2,10,18,128], index: 0, kind: input, shape index: {}]   ;;  %s4316_s1 = inlined_call_operand.vmem [shape: bf16[9,128,128], index: 1, kind: input, shape index: {}]   ;;  %s4317_s2 = inlined_call_operand.vmem [shape: f32[1,128], index: 2, kind: input, shape index: {}]   ;;  %s4318_s3 = inlined_call_operand.hbm [shape: f32[2,16,16,128], index: 3, kind: output, shape index: {}]  }
   0x1   :  { %10 = vsyncpa [#allocation3 + $0x1], 0  ;;  %s3513_s12 = smov 0   ;;  %s3515_s13 = smov 0  }
   0x2   :  { %s3517_s14 = smov 0   ;;  %s3519_s15 = smov 0  }
   0x3   :  { %s3521_s16 = smov 0   ;;  %s3523_s17 = smov 0  }
   0x4   :  { %s3525_s18 = smov 0   ;;  %s3527_s19 = smov 0  }
   0x5 LB: > { %s2405_s20 = sadd.s32 4294967295, %s3488_s19   ;;  %s2406_s21 = sadd.s32 4294967294, %s3488_s19   ;;  %s3488_s19 = sphi %s3527_s19, %s16_s19   ;;  %s3484_s18 = sphi %s3525_s18, %s4331_s18   ;;  %s3480_s17 = sphi %s3523_s17, %s4330_s17   ;;  %s3476_s16 = sphi %s3521_s16, %s4329_s16   ;;  %s3472_s15 = sphi %s3519_s15, %s4328_s15   ;;  %s3468_s14 = sphi %s3517_s14, %s4327_s14   ;;  %s3464_s13 = sphi %s3515_s13, %s4326_s13   ;;  %s3460_s12 = sphi %s3513_s12, %s4325_s12  }
   0x6   : > { %s25_s22 = sadd.s32 1, %s3480_s17  ;;  %s28_s23 = sadd.s32 1, %s3484_s18 }
   0x7   : > { %p26_p0 = scmp.ge.s32.totalorder %s25_s22, 2  ;;  %p117_p1 = scmp.ne.s32.totalorder %s3468_s14, %s3464_s13 }
   0x8   : > { %p118_p2 = scmp.eq.s32.totalorder %s2405_s20, 3  ;;  %p123_p5 = scmp.ne.s32.totalorder %s3464_s13, %s3460_s12 }
   0x9   : > { %s4333_s22 = smov (%p26_p0, %s25_s22), 0  ;;  %s4335_s23 = smov (!%p26_p0, %s28_s23), %s3484_s18 }
   0xa   : > { %s103_s24 = ssub.s32 %s3480_s17, %s4333_s22  ;;  %p3564_p3 = por %p118_p2, %p117_p1 }
   0xb   : > { %p30_p4 = scmp.ge.s32.totalorder %s4335_s23, 2  ;;  %p124_p6 = scmp.eq.s32.totalorder %s2406_s21, 3 }
   0xc   : > { %p2409_p7 = scmp.ge.s32.totalorder %s3488_s19, 1  ;;  %p160_p9 = scmp.lt.s32.totalorder %s3488_s19, 5 }
   0xd   : > { %s4337_s23 = smov (%p30_p4, %s4335_s23), 0  ;;  %p3573_p8 = por %p124_p6, %p123_p5 }
   0xe   : > { %s102_s27 = ssub.s32 %s3484_s18, %s4337_s23  ;;  %s107_s28 = sadd.s32 1, %s3468_s14 }
   0xf   : > { %s104_s29 = sor.u32 %s103_s24, %s102_s27  ;;  %p161_p10 = pnand %p2409_p7, %p160_p9 }
  0x10   : > { %p105_p11 = scmp.eq.s32.totalorder %s104_s29, 0  ;;  %v3312_v0 = vld [vmem:[%s4316_s1 + $0x40] sm:$0xff] (!%p161_p10)   ;;  %p188_p12 = scmp.lt.s32.totalorder (!%p161_p10), %s3476_s16, 1  ;;  %v3314_v2 = vld [vmem:[%s4316_s1 + $0x48] sm:$0xff] (!%p161_p10)   ;;  %v3316_v4 = vld [vmem:[%s4316_s1 + $0x50] sm:$0xff] (!%p161_p10)   ;;  %vm835_vm3 = vcmask (!%p161_p10), 1042432  }
  0x11   : > { %164 = sbr.rel (%p161_p10) target bundleno = 424 (0x1a8), region = 32  ;;  %v3313_v1 = vld [vmem:[%s4316_s1 + $0x100] sm:$0xff] (!%p161_p10)   ;;  %p190_p13 = scmp.lt.s32.totalorder (!%p161_p10), %s3472_s15, 1  ;;  %2805 = vmatprep.subr.bf16.mxu1 (!%p161_p10), %v3312_v0  ;;  %v3315_v3 = vld [vmem:[%s4316_s1 + $0x108] sm:$0xff] (!%p161_p10)   ;;  %v3317_v5 = vld [vmem:[%s4316_s1 + $0x110] sm:$0xff] (!%p161_p10)   ;;  %vm836_vm4 = vcmask (!%p161_p10), 1046532  }
  0x12   : > { %s3582_s30 = scalar_select %p105_p11, %s3468_s14, %s107_s28  }
  0x13   : > { %2933 = vmatprep.subr.bf16.mxu0 (!%p161_p10), %v3313_v1  ;;  %2806 = vmatpush3.bf16.msra.mxu1 (!%p161_p10), %v3312_v0  ;;  %v3318_v6 = vld [vmem:[%s4316_s1 + $0x58] sm:$0xff] (!%p161_p10)   ;;  %v3320_v8 = vld [vmem:[%s4316_s1 + $0x60] sm:$0xff] (!%p161_p10)   ;;  %v3322_v10 = vld [vmem:[%s4316_s1 + $0x68] sm:$0xff] (!%p161_p10)   ;;  %vm245_vm0 = vsmask.f32 (!%p161_p10), 3328  ;;  %s2656_s29 = sshll.u32 (!%p161_p10), %s3476_s16, 5 }
  0x14   : > { %2934 = vmatpush3.bf16.msra.mxu0 (!%p161_p10), %v3313_v1  ;;  %2807 = vmatprep.subr.bf16.mxu1 (!%p161_p10), %v3314_v2  ;;  %v3319_v7 = vld [vmem:[%s4316_s1 + $0x118] sm:$0xff] (!%p161_p10)   ;;  %v3321_v9 = vld [vmem:[%s4316_s1 + $0x120] sm:$0xff] (!%p161_p10)   ;;  %v3323_v11 = vld [vmem:[%s4316_s1 + $0x128] sm:$0xff] (!%p161_p10)   ;;  %vm246_vm1 = vsmask.f32 (!%p161_p10), 7440  ;;  %s3490_s11 = smov (!%p161_p10), [#allocation2]  }
  0x15   : > { %2935 = vmatprep.subr.bf16.mxu0 (!%p161_p10), %v3315_v3  ;;  %v3324_v17 = vld [vmem:[%s4316_s1 + $0x70] sm:$0xff] (!%p161_p10)   ;;  %v3326_v35 = vld [vmem:[%s4316_s1 + $0x78] sm:$0xff] (!%p161_p10)   ;;  %vm3667_vm2 = vmor (!%p161_p10), %vm245_vm0, %vm246_vm1 }
  0x16   : > { %v3325_v30 = vld [vmem:[%s4316_s1 + $0x130] sm:$0xff] (!%p161_p10)   ;;  %v3327_v51 = vld [vmem:[%s4316_s1 + $0x138] sm:$0xff] (!%p161_p10)   ;;  %v3328_v0 = vld [vmem:[%s4316_s1] sm:$0xff] (!%p161_p10)  }
  0x17   : > { %2808 = vmatpush3.bf16.msra.mxu1 (!%p161_p10), %v3314_v2  ;;  %vm3868_vm5 = vmor (!%p161_p10), %vm835_vm3, %vm836_vm4 }
  0x18   : > { %s189_s10 = scalar_select %p188_p12, %s3476_s16, 1  ;;  %2936 = vmatpush3.bf16.msra.mxu0 %v3315_v3  ;;  %2809 = vmatprep.subr.bf16.mxu1 %v3316_v4 }
  0x19   : > { %s191_s21 = scalar_select %p190_p13, %s3472_s15, 1  ;;  %2937 = vmatprep.subr.bf16.mxu0 %v3317_v5 }
  0x1a   : > { %s3238_s28 = smul.u32 60, %s189_s10 }
  0x1b   : > { %s3237_s5 = smul.u32 30, %s191_s21  ;;  %2810 = vmatpush3.bf16.msra.mxu1 %v3316_v4  ;;  %v3329_v4 = vld [vmem:[%s4316_s1 + $0x140] sm:$0xff]  }
  0x1c   : > { %2938 = vmatpush3.bf16.msra.mxu0 %v3317_v5  ;;  %2811 = vmatprep.subr.bf16.mxu1 %v3318_v6 }
  0x1d   : > { %s194_s6 = sadd.s32 %s3238_s28, %s3237_s5  ;;  %2939 = vmatprep.subr.bf16.mxu0 %v3319_v7  ;;  %s2660_s28 = sshll.u32 %s3472_s15, 4 }
  0x1e   : > { %s2411_s10 = sshll.u32 %s194_s6, 2  ;;  %s2317_s15 = sadd.s32 %s2660_s28, %s2656_s29 }
  0x1f   : > { %s3621_s4 = scalar_lea.vmem %s4315_s0, %s2411_s10  ;;  %2812 = vmatpush3.bf16.msra.mxu1 %v3318_v6  ;;  %s185_s10 = sand.u32 1, %s3464_s13  }
  0x20   : > { %2940 = vmatpush3.bf16.msra.mxu0 %v3319_v7  ;;  %2813 = vmatprep.subr.bf16.mxu1 %v3320_v8  ;;  %v3630_v12 = vld [vmem:[%s3621_s4] sm:$0xf]  ;;  %v3633_v13 = vld [vmem:[%s3621_s4 + $0x4] sm:$0xf]  ;;  %v3636_v14 = vld [vmem:[%s3621_s4 + $0x8] sm:$0x1] }
  0x21   : > { %2941 = vmatprep.subr.bf16.mxu0 %v3321_v9  ;;  %v249_v15 = vshrl.u32 %v3630_v12, 16  ;;  %v252_v16 = vshll.u32 %v3630_v12, 16  ;;  %v258_v18 = vshll.u32 %v3633_v13, 16  ;;  %v262_v19 = vshrl.u32 %v3633_v13, 16  ;;  %v3647_v21 = vld [vmem:[%s3621_s4 + $0xc] sm:$0xf] }
  0x22   : > { %v268_v20 = vshll.u32 %v3636_v14, 16  ;;  %v3650_v24 = vld [vmem:[%s3621_s4 + $0x10] sm:$0xf]  ;;  %v3653_v25 = vld [vmem:[%s3621_s4 + $0x14] sm:$0x1]  ;;  %v273_v29 = vshrl.u32 %v3647_v21, 16 }
  0x23   : > { %2814 = vmatpush3.bf16.msra.mxu1 %v3320_v8  ;;  %v251_v22 = vrot.slane %v249_v15, 4  ;;  %v254_v23 = vrot.slane %v252_v16, 5  ;;  %v260_v26 = vrot.slane %v258_v18, 5  ;;  %v264_v27 = vrot.slane %v262_v19, 4  ;;  %v3673_v40 = vld [vmem:[%s3621_s4 + $0x18] sm:$0xf] }
  0x24   : > { %2942 = vmatpush3.bf16.msra.mxu0 %v3321_v9  ;;  %2815 = vmatprep.subr.bf16.mxu1 %v3322_v10  ;;  %v270_v28 = vrot.slane %v268_v20, 5  ;;  %v276_v32 = vshll.u32 %v3647_v21, 16  ;;  %v282_v33 = vshll.u32 %v3650_v24, 16  ;;  %v286_v34 = vshrl.u32 %v3650_v24, 16  ;;  %v3676_v41 = vld [vmem:[%s3621_s4 + $0x1c] sm:$0xf] }
  0x25   : > { %2943 = vmatprep.subr.bf16.mxu0 %v3323_v11  ;;  %v255_v31 = vor.u32 %v254_v23, %v251_v22  ;;  %v265_v37 = vor.u32 %v264_v27, %v260_v26  ;;  %v275_v38 = vrot.slane %v273_v29, 4  ;;  %v292_v39 = vshll.u32 %v3653_v25, 16  ;;  %v3679_v46 = vld [vmem:[%s3621_s4 + $0x20] sm:$0x1]  ;;  %v3704_v7 = vld [vmem:[%s3621_s4 + $0x24] sm:$0xf] }
  0x26   : > { %v278_v43 = vrot.slane %v276_v32, 5  ;;  %v284_v44 = vrot.slane %v282_v33, 5  ;;  %v288_v45 = vrot.slane %v286_v34, 4  ;;  %v297_v49 = vshrl.u32 %v3673_v40, 16  ;;  %v3707_v8 = vld [vmem:[%s3621_s4 + $0x28] sm:$0xf] }
  0x27   : > { %2816 = vmatpush3.bf16.msra.mxu1 %v3322_v10  ;;  %v256_v42 = vrot.slane %v255_v31, 4  ;;  %v266_v47 = vrot.slane %v265_v37, 4  ;;  %v294_v48 = vrot.slane %v292_v39, 5  ;;  %v300_v50 = vshll.u32 %v3673_v40, 16  ;;  %v3710_v9 = vld [vmem:[%s3621_s4 + $0x2c] sm:$0x1] }
  0x28   : > { %2944 = vmatpush3.bf16.msra.mxu0 %v3323_v11  ;;  %2817 = vmatprep.subr.bf16.mxu1 %v3324_v17  ;;  %v279_v53 = vor.u32 %v278_v43, %v275_v38  ;;  %v289_v54 = vor.u32 %v288_v45, %v284_v44  ;;  %v306_v55 = vshll.u32 %v3676_v41, 16  ;;  %v299_v57 = vrot.slane %v297_v49, 4  ;;  %v3720_v23 = vld [vmem:[%s3621_s4 + $0x30] sm:$0xf]  ;;  %v3726_v29 = vld [vmem:[%s3621_s4 + $0x34] sm:$0xf] }
  0x29   : > { %2945 = vmatprep.subr.bf16.mxu0 %v3325_v30  ;;  %v261_v52 = vsel %vm3667_vm2, %v256_v42, %v260_v26  ;;  %v271_v56 = vsel %vm3667_vm2, %v266_v47, %v270_v28  ;;  %v302_v58 = vrot.slane %v300_v50, 5  ;;  %v310_v59 = vshrl.u32 %v3676_v41, 16  ;;  %v3331_v37 = vld [vmem:[%s4316_s1 + $0x148] sm:$0xff]   ;;  %v3332_v47 = vld [vmem:[%s4316_s1 + $0x10] sm:$0xff]   ;;  %s2410_s20 = sshll.u32 %s185_s10, 7  ;;  %s2657_s16 = sshll.u32 %s2317_s15, 7 }
  0x2a   : > { %v2428_v60 = vcombine.low %v261_v52, %v271_v56  ;;  %v280_v61 = vrot.slane %v279_v53, 4  ;;  %v290_v62 = vrot.slane %v289_v54, 4  ;;  %v308_v63 = vrot.slane %v306_v55, 5  ;;  %v3333_v56 = vld [vmem:[%s4316_s1 + $0x150] sm:$0xff]   ;;  %s4215_s27 = scalar_lea.vmem [#allocation2], %s2410_s20  ;;  %s4263_s8 = scalar_lea.sflag [#allocation3], %s185_s10 }
  0x2b   : > { %2818 = vmatpush3.bf16.msra.mxu1 %v3324_v17  ;;  %v303_v1 = vor.u32 %v302_v58, %v299_v57  ;;  %v312_v2 = vrot.slane %v310_v59, 4  ;;  %v316_v3 = vshll.u32 %v3679_v46, 16  ;;  %v3330_v17 = vld [vmem:[%s4316_s1 + $0x8] sm:$0xff]   ;;  %v321_v18 = vshrl.u32 %v3704_v7, 16  ;;  %s2320_s5 = sshll.u32 %s4215_s27, 4  ;;  %s3398_s20 = sshll.u32 %s3490_s11, 4  ;;  %s4255_s5 = int_to_ptr.vmem [resolvable:$true] %s2320_s5  ;;  %s3399_s20 = int_to_ptr.vmem [resolvable:$false] %s3398_s20 }
  0x2c   : > { %2946 = vmatpush3.bf16.msra.mxu0 %v3325_v30  ;;  %2819 = vmatprep.subr.bf16.mxu1 %v3326_v35  ;;  %v285_v5 = vsel %vm3667_vm2, %v280_v61, %v284_v44  ;;  %v295_v6 = vsel %vm3667_vm2, %v290_v62, %v294_v48  ;;  %v324_v19 = vshll.u32 %v3704_v7, 16  ;;  %v330_v20 = vshll.u32 %v3707_v8, 16  ;;  %v3729_v30 = vld [vmem:[%s3621_s4 + $0x38] sm:$0x1]  ;;  %v3755_v61 = vld [vmem:[%s3621_s4 + $0x40] sm:$0xf]  ;;  %p3401_p4 = scmp.lt.s32.totalorder %s4255_s5, %s3399_s20 }
  0x2d   : > { %2947 = vmatprep.subr.bf16.mxu0 %v3327_v51  ;;  %2821 = vmatprep.mubr.bf16.mxu1 %v2428_v60  ;;  %v2429_v10 = vcombine.low %v285_v5, %v295_v6  ;;  %v304_v11 = vrot.slane %v303_v1, 4  ;;  %v313_v15 = vor.u32 %v312_v2, %v308_v63  ;;  %v318_v16 = vrot.slane %v316_v3, 5  ;;  %v3752_v60 = vld [vmem:[%s3621_s4 + $0x3c] sm:$0xf]  ;;  %s3394_s9 = scalar_lea.vmem %s4255_s5, 2048  ;;  %s3400_s24 = scalar_lea.vmem %s3399_s20, 4096 }
  0x2e   : > { %v334_v22 = vshrl.u32 %v3707_v8, 16  ;;  %v340_v28 = vshll.u32 %v3710_v9, 16  ;;  %v323_v31 = vrot.slane %v321_v18, 4  ;;  %v326_v32 = vrot.slane %v324_v19, 5  ;;  %v3334_v6 = vld [vmem:[%s4316_s1 + $0x18] sm:$0xff]   ;;  %p3395_p0 = scmp.ne.s32.totalorder %s4255_s5, %s3394_s9  ;;  %p3402_p5 = scmp.lt.s32.totalorder %s3400_s24, %s3394_s9 }
  0x2f   : > { %2820 = vmatpush3.bf16.msra.mxu1 %v3326_v35  ;;  %2949 = vmatprep.mubr.bf16.mxu0 %v2429_v10  ;;  %v309_v26 = vsel %vm3667_vm2, %v304_v11, %v308_v63  ;;  %v314_v27 = vrot.slane %v313_v15, 4  ;;  %v332_v33 = vrot.slane %v330_v20, 5  ;;  %v345_v39 = vshrl.u32 %v3720_v23, 16  ;;  %v3775_v18 = vld [vmem:[%s3621_s4 + $0x48] sm:$0xf] }
  0x30   : > { %2948 = vmatpush3.bf16.msra.mxu0 %v3327_v51  ;;  %2837 = vmatprep.subr.bf16.mxu1 %v3328_v0  ;;  %v336_v34 = vrot.slane %v334_v22, 4  ;;  %v342_v38 = vrot.slane %v340_v28, 5  ;;  %v348_v42 = vshll.u32 %v3720_v23, 16  ;;  %v327_v44 = vor.u32 %v326_v32, %v323_v31  ;;  %v3335_v28 = vld [vmem:[%s4316_s1 + $0x158] sm:$0xff]   ;;  %p3396_p1 = pnand %p3395_p0, %p3564_p3  ;;  %p3403_p6 = por %p3402_p5, %p3401_p4 }
  0x31   : > { %2965 = vmatprep.subr.bf16.mxu0 %v3329_v4  ;;  %v319_v35 = vsel %vm3667_vm2, %v314_v27, %v318_v16  ;;  %v354_v48 = vshll.u32 %v3726_v29, 16  ;;  %v347_v49 = vrot.slane %v345_v39, 4  ;;  %v358_v51 = vshrl.u32 %v3726_v29, 16  ;;  %v3784_v27 = vld [vmem:[%s3621_s4 + $0x50] sm:$0x1] }
  0x32   : > { %2822 = vmatmul.mubr.bf16.vlgmr.msra.gmra.mrb[0].mxu1 %v2429_v10  ;;  %v3738_v43 = vcombine.low %v309_v26, %v319_v35  ;;  %v337_v45 = vor.u32 %v336_v34, %v332_v33  ;;  %v350_v50 = vrot.slane %v348_v42, 5  ;;  %v364_v52 = vshll.u32 %v3729_v30, 16  ;;  %v3781_v26 = vld [vmem:[%s3621_s4 + $0x4c] sm:$0xf]  ;;  %p3397_p2 = pneg %p3396_p1 }
  0x33   : > { %2838 = vmatpush3.bf16.msra.mxu1 %v3328_v0  ;;  %v328_v53 = vrot.slane %v327_v44, 4  ;;  %v356_v55 = vrot.slane %v354_v48, 5  ;;  %v360_v58 = vrot.slane %v358_v51, 4  ;;  %v3762_v0 = vld [vmem:[%s3621_s4 + $0x44] sm:$0x1]  ;;  %v369_v1 = vshrl.u32 %v3752_v60, 16 }
  0x34   : > { %2839 = vmatprep.subr.bf16.mxu1 %v3330_v17  ;;  %2950 = vmatmul.mubr.bf16.vlgmr.msra.gmra.mrb[0].mxu0 %v3738_v43  ;;  %v338_v54 = vrot.slane %v337_v45, 4  ;;  %v351_v57 = vor.u32 %v350_v50, %v347_v49  ;;  %v366_v59 = vrot.slane %v364_v52, 5  ;;  %v372_v2 = vshll.u32 %v3752_v60, 16  ;;  %p3404_p7 = pnand %p3403_p6, %p3397_p2 }
  0x35   : > { %2825 = vmatprep.mubr.bf16.mxu1 %v3738_v43  ;;  %2966 = vmatpush3.bf16.msra.mxu0 %v3329_v4  ;;  %v333_v62 = vsel %vm3667_vm2, %v328_v53, %v332_v33  ;;  %v361_v5 = vor.u32 %v360_v58, %v356_v55  ;;  %v378_v10 = vshll.u32 %v3755_v61, 16  ;;  %v371_v11 = vrot.slane %v369_v1, 4 }
  0x36   : > { %2967 = vmatprep.subr.bf16.mxu0 %v3331_v37  ;;  %v343_v63 = vsel %vm3667_vm2, %v338_v54, %v342_v38  ;;  %v352_v4 = vrot.slane %v351_v57, 4  ;;  %v374_v15 = vrot.slane %v372_v2, 5  ;;  %v382_v16 = vshrl.u32 %v3755_v61, 16  ;;  %v3809_v57 = vld [vmem:[%s3621_s4 + $0x54] sm:$0xf] }
  0x37   : > { %2840 = vmatpush3.bf16.msra.mxu1 %v3330_v17  ;;  %v3766_v3 = vcombine.low %v333_v62, %v343_v63  ;;  %v388_v17 = vshll.u32 %v3762_v0, 16  ;;  %v362_v20 = vrot.slane %v361_v5, 4  ;;  %v380_v22 = vrot.slane %v378_v10, 5  ;;  %v3813_v62 = vld [vmem:[%s3621_s4 + $0x58] sm:$0xf] }
  0x38   : > { %2841 = vmatprep.subr.bf16.mxu1 %v3332_v47  ;;  %v357_v19 = vsel %vm3667_vm2, %v352_v4, %v356_v55  ;;  %v375_v31 = vor.u32 %v374_v15, %v371_v11  ;;  %v384_v32 = vrot.slane %v382_v16, 4  ;;  %v393_v34 = vshrl.u32 %v3775_v18, 16  ;;  %v3337_v55 = vld [vmem:[%s4316_s1 + $0x160] sm:$0xff]   ;;  %v3816_v63 = vld [vmem:[%s3621_s4 + $0x5c] sm:$0x1]  ;;  %v3338_v4 = vld [vmem:[%s4316_s1 + $0x28] sm:$0xff]  }
  0x39   : > { %2968 = vmatpush3.bf16.msra.mxu0 %v3331_v37  ;;  %2953 = vmatprep.mubr.bf16.mxu0 %v3766_v3  ;;  %v390_v33 = vrot.slane %v388_v17, 5  ;;  %v367_v35 = vsel %vm3667_vm2, %v362_v20, %v366_v59  ;;  %v3336_v37 = vld [vmem:[%s4316_s1 + $0x20] sm:$0xff]   ;;  %v396_v38 = vshll.u32 %v3775_v18, 16  ;;  %v402_v39 = vshll.u32 %v3781_v26, 16  ;;  %v3339_v17 = vld [vmem:[%s4316_s1 + $0x168] sm:$0xff]  }
  0x3a   : > { %2826 = vmatmul.mubr.bf16.gmra.mrb[4].mxu1 %v3766_v3  ;;  %2969 = vmatprep.subr.bf16.mxu0 %v3333_v56  ;;  %v406_v42 = vshrl.u32 %v3781_v26, 16  ;;  %v3799_v44 = vcombine.low %v357_v19, %v367_v35  ;;  %v376_v45 = vrot.slane %v375_v31, 4  ;;  %v385_v48 = vor.u32 %v384_v32, %v380_v22  ;;  %v3340_v35 = vld [vmem:[%s4316_s1 + $0x30] sm:$0xff]  }
  0x3b   : > { %2842 = vmatpush3.bf16.msra.mxu1 %v3332_v47  ;;  %v395_v49 = vrot.slane %v393_v34, 4  ;;  %v398_v47 = vrot.slane %v396_v38, 5  ;;  %v404_v50 = vrot.slane %v402_v39, 5  ;;  %v412_v52 = vshll.u32 %v3784_v27, 16  ;;  %v3846_v38 = vld [vmem:[%s3621_s4 + $0x64] sm:$0xf] }
  0x3c   : > { %2843 = vmatprep.subr.bf16.mxu1 %v3334_v6  ;;  %v408_v51 = vrot.slane %v406_v42, 4  ;;  %2954 = vmatmul.mubr.bf16.gmra.mrb[4].mxu0 %v3799_v44  ;;  %v381_v53 = vsel %vm3667_vm2, %v376_v45, %v380_v22  ;;  %v386_v54 = vrot.slane %v385_v48, 4  ;;  %v417_v1 = vshrl.u32 %v3809_v57, 16  ;;  %v3849_v39 = vld [vmem:[%s3621_s4 + $0x68] sm:$0x1] }
  0x3d   : > { %2970 = vmatpush3.bf16.msra.mxu0 %v3333_v56  ;;  %2829 = vmatprep.mubr.bf16.mxu1 %v3799_v44  ;;  %v399_v56 = vor.u32 %v398_v47, %v395_v49  ;;  %v414_v59 = vrot.slane %v412_v52, 5  ;;  %v420_v5 = vshll.u32 %v3809_v57, 16  ;;  %v430_v10 = vshrl.u32 %v3813_v62, 16 }
  0x3e   : > { %2971 = vmatprep.subr.bf16.mxu0 %v3335_v28  ;;  %v409_v58 = vor.u32 %v408_v51, %v404_v50  ;;  %v391_v2 = vsel %vm3667_vm2, %v386_v54, %v390_v33  ;;  %v419_v19 = vrot.slane %v417_v1, 4  ;;  %v436_v32 = vshll.u32 %v3816_v63, 16  ;;  %v3834_v33 = vld [vmem:[%s3621_s4 + $0x60] sm:$0xf]  ;;  %v3341_v51 = vld [vmem:[%s4316_s1 + $0x170] sm:$0xff]  }
  0x3f   : > { %2844 = vmatpush3.bf16.msra.mxu1 %v3334_v6  ;;  %v426_v6 = vshll.u32 %v3813_v62, 16  ;;  %v3827_v11 = vcombine.low %v381_v53, %v391_v2  ;;  %v400_v15 = vrot.slane %v399_v56, 4  ;;  %v422_v20 = vrot.slane %v420_v5, 5 }
  0x40   : > { %2845 = vmatprep.subr.bf16.mxu1 %v3336_v37  ;;  %v410_v16 = vrot.slane %v409_v58, 4  ;;  %v432_v31 = vrot.slane %v430_v10, 4  ;;  %v1289_v42 = vshrl.u32 %v3834_v33, 16  ;;  %v1292_v45 = vshll.u32 %v3834_v33, 16 }
  0x41   : > { %2972 = vmatpush3.bf16.msra.mxu0 %v3335_v28  ;;  %v428_v22 = vrot.slane %v426_v6, 5  ;;  %2957 = vmatprep.mubr.bf16.mxu0 %v3827_v11  ;;  %v405_v28 = vsel %vm3667_vm2, %v400_v15, %v404_v50  ;;  %v423_v49 = vor.u32 %v422_v20, %v419_v19  ;;  %v438_v50 = vrot.slane %v436_v32, 5 }
  0x42   : > { %2973 = vmatprep.subr.bf16.mxu0 %v3337_v55  ;;  %2830 = vmatmul.mubr.bf16.gmra.mrb[8].mxu1 %v3827_v11  ;;  %v415_v34 = vsel %vm3667_vm2, %v410_v16, %v414_v59  ;;  %v1291_v52 = vrot.slane %v1289_v42, 4  ;;  %v1294_v53 = vrot.slane %v1292_v45, 5  ;;  %v1298_v54 = vshll.u32 %v3846_v38, 16 }
  0x43   : > { %v3853_v48 = vcombine.low %v405_v28, %v415_v34  ;;  %2846 = vmatpush3.bf16.msra.mxu1 %v3336_v37  ;;  %v433_v47 = vor.u32 %v432_v31, %v428_v22  ;;  %v1302_v56 = vshrl.u32 %v3846_v38, 16  ;;  %v424_v58 = vrot.slane %v423_v49, 4  ;;  %v3342_v34 = vld [vmem:[%s4316_s1 + $0x38] sm:$0xff]  }
  0x44   : > { %2847 = vmatprep.subr.bf16.mxu1 %v3338_v4  ;;  %v1308_v59 = vshll.u32 %v3849_v39, 16  ;;  %v2461_v1 = vrot.slane %v3647_v21, 9  ;;  %v1295_v2 = vor.u32 %v1294_v53, %v1291_v52  ;;  %v2444_v6 = vcombine.low %v3630_v12, %v3633_v13 }
  0x45   : > { %2974 = vmatpush3.bf16.msra.mxu0 %v3337_v55  ;;  %v434_v37 = vrot.slane %v433_v47, 4  ;;  %2833 = vmatprep.mubr.bf16.mxu1 %v3853_v48  ;;  %v1300_v55 = vrot.slane %v1298_v54, 5  ;;  %v1304_v5 = vrot.slane %v1302_v56, 4  ;;  %v429_v15 = vsel %vm3667_vm2, %v424_v58, %v428_v22  ;;  %v3343_v22 = vld [vmem:[%s4316_s1 + $0x178] sm:$0xff]  }
  0x46   : > { %2958 = vmatmul.mubr.bf16.gmra.mrb[8].mxu0 %v3853_v48  ;;  %2975 = vmatprep.subr.bf16.mxu0 %v3339_v17  ;;  %v1310_v19 = vrot.slane %v1308_v59, 5  ;;  %v847_v20 = vrot.slane %v3650_v24, 5  ;;  %v1296_v32 = vrot.slane %v1295_v2, 4  ;;  %v854_v45 = vrot.slane %v3676_v41, 5 }
  0x47   : > { %2848 = vmatpush3.bf16.msra.mxu1 %v3338_v4  ;;  %v439_v16 = vsel %vm3667_vm2, %v434_v37, %v438_v50  ;;  %v1305_v28 = vor.u32 %v1304_v5, %v1300_v55  ;;  %v850_v4 = vrot.slane %v3653_v25, 5  ;;  %v3895_v25 = vcombine.low %v3834_v33, %v3846_v38 }
  0x48   : > { %v3877_v31 = vcombine.low %v429_v15, %v439_v16  ;;  %2849 = vmatprep.subr.bf16.mxu1 %v3340_v35  ;;  %v848_v42 = vsel %vm3868_vm5, %v2461_v1, %v847_v20  ;;  %v1301_v49 = vsel %vm3667_vm2, %v1296_v32, %v1300_v55  ;;  %v857_v50 = vrot.slane %v3679_v46, 5  ;;  %v3346_v46 = vld [vmem:[%s4316_s1 + $0x80] sm:$0xff]  }
  0x49   : > { %2976 = vmatpush3.bf16.msra.mxu0 %v3339_v17  ;;  %v849_v17 = vrot.slane %v847_v20, 4  ;;  %v1306_v47 = vrot.slane %v1305_v28, 4  ;;  %v2462_v53 = vrot.slane %v3673_v40, 9  ;;  %v856_v58 = vrot.slane %v854_v45, 4 }
  0x4a   : > { %2977 = vmatprep.subr.bf16.mxu0 %v3341_v51  ;;  %2961 = vmatprep.mubr.bf16.mxu0 %v3877_v31  ;;  %v861_v37 = vrot.slane %v3707_v8, 5  ;;  %v2463_v1 = vrot.slane %v3704_v7, 9  ;;  %v3918_v2 = vcombine.low %v3647_v21, %v3650_v24  ;;  %v3923_v5 = vcombine.low %v3673_v40, %v3676_v41  ;;  %v3348_v21 = vld [vmem:[%s4316_s1 + $0x88] sm:$0xff]  }
  0x4b   : > { %2834 = vmatmul.mubr.bf16.gmra.mrb[12].mxu1 %v3877_v31  ;;  %v851_v52 = vsel %vm3868_vm5, %v849_v17, %v850_v4  ;;  %v1311_v54 = vsel %vm3667_vm2, %v1306_v47, %v1310_v19  ;;  %v868_v24 = vrot.slane %v3726_v29, 5  ;;  %v875_v15 = vrot.slane %v3755_v61, 5  ;;  %v3349_v19 = vld [vmem:[%s4316_s1 + $0x188] sm:$0xff]   ;;  %v3352_v4 = vld [vmem:[%s4316_s1 + $0x90] sm:$0xff]  }
  0x4c   : > { %2850 = vmatpush3.bf16.msra.mxu1 %v3340_v35  ;;  %2853 = vmatprep.mubr.bf16.mxu1 %v2444_v6  ;;  %v3903_v56 = vcombine.low %v848_v42, %v851_v52  ;;  %v3906_v59 = vcombine.low %v1301_v49, %v1311_v54  ;;  %v3347_v35 = vld [vmem:[%s4316_s1 + $0x180] sm:$0xff]   ;;  %v863_v55 = vrot.slane %v861_v37, 4  ;;  %v855_v6 = vsel %vm3868_vm5, %v2462_v53, %v854_v45 }
  0x4d   : > { %2978 = vmatpush3.bf16.msra.mxu0 %v3341_v51  ;;  %2851 = vmatprep.subr.bf16.mxu1 %v3342_v34  ;;  %v864_v51 = vrot.slane %v3710_v9, 5  ;;  %v858_v9 = vsel %vm3868_vm5, %v856_v58, %v857_v50  ;;  %v862_v40 = vsel %vm3868_vm5, %v2463_v1, %v861_v37  ;;  %v2464_v20 = vrot.slane %v3720_v23, 9  ;;  %v3355_v37 = vld [vmem:[%s4316_s1 + $0x198] sm:$0xff]  }
  0x4e   : > { %2979 = vmatprep.subr.bf16.mxu0 %v3343_v22  ;;  %2962 = vmatmul.mubr.bf16.gmra.mrb[12].mxu0 %v3906_v59  ;;  %v3940_v16 = vcombine.low %v855_v6, %v858_v9  ;;  %v870_v28 = vrot.slane %v868_v24, 4  ;;  %v877_v42 = vrot.slane %v875_v15, 4  ;;  %v878_v17 = vrot.slane %v3762_v0, 5  ;;  %v3354_v0 = vld [vmem:[%s4316_s1 + $0x98] sm:$0xff]  }
  0x4f   : > { %2981 = vmatprep.mubr.bf16.mxu0 %v3903_v56  ;;  %v865_v41 = vsel %vm3868_vm5, %v863_v55, %v864_v51  ;;  %v3957_v45 = vcombine.low %v3704_v7, %v3707_v8  ;;  %v3965_v49 = vcombine.low %v3720_v23, %v3726_v29  ;;  %v882_v47 = vrot.slane %v3781_v26, 5 }
  0x50   : > { %2852 = vmatpush3.bf16.msra.mxu1 %v3342_v34  ;;  %v3947_v32 = vcombine.low %v862_v40, %v865_v41  ;;  %v871_v34 = vrot.slane %v3729_v30, 5  ;;  %v3353_v30 = vld [vmem:[%s4316_s1 + $0x190] sm:$0xff]   ;;  %v843_v50 = vrot.slane %v3636_v14, 5  ;;  %v869_v7 = vsel %vm3868_vm5, %v2464_v20, %v868_v24 }
  0x51   : > { %2980 = vmatpush3.bf16.msra.mxu0 %v3343_v22  ;;  %2869 = vmatprep.subr.bf16.mxu1 %v3346_v46  ;;  %v2465_v22 = vrot.slane %v3752_v60, 9  ;;  %v879_v14 = vsel %vm3868_vm5, %v877_v42, %v878_v17  ;;  %v889_v29 = vrot.slane %v3813_v62, 5  ;;  %v2460_v52 = vrot.slane %v3630_v12, 9  ;;  %v3366_v17 = vld [vmem:[%s4316_s1 + $0xb8] sm:$0xff]  }
  0x52   : > { %2997 = vmatprep.subr.bf16.mxu0 %v3347_v35  ;;  %v872_v8 = vsel %vm3868_vm5, %v870_v28, %v871_v34  ;;  %v2466_v53 = vrot.slane %v3775_v18, 9  ;;  %v840_v54 = vrot.slane %v3633_v13, 5  ;;  %v884_v12 = vrot.slane %v882_v47, 4 }
  0x53   : > { %2854 = vmatmul.mubr.bf16.vlgmr.msra.gmra.mrb[0].mxu1 %v3918_v2  ;;  %v876_v23 = vsel %vm3868_vm5, %v2465_v22, %v875_v15  ;;  %v3986_v58 = vcombine.low %v869_v7, %v872_v8  ;;  %v2467_v13 = vrot.slane %v3809_v57, 9  ;;  %v891_v6 = vrot.slane %v889_v29, 4  ;;  %v3364_v22 = vld [vmem:[%s4316_s1 + $0xb0] sm:$0xff]   ;;  %v3369_v7 = vld [vmem:[%s4316_s1 + $0x1c0] sm:$0xff]   ;;  %v3371_v8 = vld [vmem:[%s4316_s1 + $0x1c8] sm:$0xff]  }
  0x54   : > { %2870 = vmatpush3.bf16.msra.mxu1 %v3346_v46  ;;  %2857 = vmatprep.mubr.bf16.mxu1 %v3923_v5  ;;  %v3358_v46 = vld [vmem:[%s4316_s1 + $0xa0] sm:$0xff]   ;;  %v3996_v1 = vcombine.low %v876_v23, %v879_v14  ;;  %v841_v51 = vsel %vm3868_vm5, %v2460_v52, %v840_v54  ;;  %v842_v55 = vrot.slane %v840_v54, 4  ;;  %v892_v9 = vrot.slane %v3816_v63, 5  ;;  %v3373_v23 = vld [vmem:[%s4316_s1 + $0x1d0] sm:$0xff]   ;;  %v3375_v14 = vld [vmem:[%s4316_s1 + $0x1d8] sm:$0xff]  }
  0x55   : > { %2871 = vmatprep.subr.bf16.mxu1 %v3348_v21  ;;  %v4011_v24 = vcombine.low %v3775_v18, %v3781_v26  ;;  %v883_v63 = vsel %vm3868_vm5, %v2466_v53, %v882_v47  ;;  %v1497_v41 = vrot.slane %v3846_v38, 5  ;;  %v3359_v18 = vld [vmem:[%s4316_s1 + $0x1a0] sm:$0xff]   ;;  %v890_v26 = vsel %vm3868_vm5, %v2467_v13, %v889_v29  ;;  %v3361_v38 = vld [vmem:[%s4316_s1 + $0x1a8] sm:$0xff]   ;;  %v3383_v13 = vld [vmem:[%s4316_s1 + $0x1f0] sm:$0xff]  }
  0x56   : > { %2982 = vmatmul.mubr.bf16.vlgmr.msra.gmra.mrb[0].mxu0 %v3940_v16  ;;  %v893_v15 = vsel %vm3868_vm5, %v891_v6, %v892_v9  ;;  %v2550_v20 = vrot.slane %v3834_v33, 9  ;;  %v4045_v42 = vcombine.low %v3809_v57, %v3813_v62  ;;  %v3365_v57 = vld [vmem:[%s4316_s1 + $0x1b0] sm:$0xff]   ;;  %v3368_v47 = vld [vmem:[%s4316_s1 + $0xc0] sm:$0xff]   ;;  %v3378_v52 = vld [vmem:[%s4316_s1 + $0xe8] sm:$0xff]  }
  0x57   : > { %2998 = vmatpush3.bf16.msra.mxu0 %v3347_v35  ;;  %2985 = vmatprep.mubr.bf16.mxu0 %v3947_v32  ;;  %v885_v35 = vrot.slane %v3784_v27, 5  ;;  %v844_v27 = vsel %vm3868_vm5, %v842_v55, %v843_v50  ;;  %v4037_v28 = vcombine.low %v890_v26, %v893_v15  ;;  %v1499_v34 = vrot.slane %v1497_v41, 4  ;;  %v3370_v50 = vld [vmem:[%s4316_s1 + $0xc8] sm:$0xff]   ;;  %v3376_v29 = vld [vmem:[%s4316_s1 + $0xe0] sm:$0xff]   ;;  %v3385_v55 = vld [vmem:[%s4316_s1 + $0x1f8] sm:$0xff]  }
  0x58   : > { %2872 = vmatpush3.bf16.msra.mxu1 %v3348_v21  ;;  %2999 = vmatprep.subr.bf16.mxu0 %v3349_v19  ;;  %v4004_v21 = vcombine.low %v3752_v60, %v3755_v61  ;;  %v2484_v40 = vcombine.low %v841_v51, %v844_v27  ;;  %v3360_v61 = vld [vmem:[%s4316_s1 + $0xa8] sm:$0xff]   ;;  %v1498_v33 = vsel %vm3868_vm5, %v2550_v20, %v1497_v41  ;;  %v3377_v53 = vld [vmem:[%s4316_s1 + $0x1e0] sm:$0xff]   ;;  %v3388_v9 = vld [vmem:[%s4316_s1 + $0x210] sm:$0xff]  }
  0x59   : > { %2873 = vmatprep.subr.bf16.mxu1 %v3352_v4  ;;  %v886_v60 = vsel %vm3868_vm5, %v884_v12, %v885_v35  ;;  %v3379_v54 = vld [vmem:[%s4316_s1 + $0x1e8] sm:$0xff]   ;;  %v4122_v12 = vld [vmem:[%s3621_s4 + $0x70] sm:$0xf]  ;;  %v3384_v35 = vld [vmem:[%s4316_s1 + $0xf8] sm:$0xff]  }
  0x5a   : > { %v3386_v6 = vld [vmem:[%s4316_s1 + $0x200] sm:$0xff]   ;;  %v228_v41 = vld [vmem:[%s3621_s4 + $0x74] sm:$0x1] }
  0x5b   : > { %2858 = vmatmul.mubr.bf16.gmra.mrb[4].mxu1 %v3957_v45  ;;  %3000 = vmatpush3.bf16.msra.mxu0 %v3349_v19  ;;  %v4030_v19 = vcombine.low %v883_v63, %v886_v60  ;;  %v1888_v26 = vshll.u32 %v228_v41, 16 }
  0x5c   : > { %2874 = vmatpush3.bf16.msra.mxu1 %v3352_v4  ;;  %2861 = vmatprep.mubr.bf16.mxu1 %v3965_v49  ;;  %v1500_v4 = vrot.slane %v3849_v39, 5 }
  0x5d   : > { %2875 = vmatprep.subr.bf16.mxu1 %v3354_v0  ;;  %3001 = vmatprep.subr.bf16.mxu0 %v3353_v30 }
  0x5e   : > { %2986 = vmatmul.mubr.bf16.gmra.mrb[4].mxu0 %v3986_v58  ;;  %v1501_v39 = vsel %vm3868_vm5, %v1499_v34, %v1500_v4  ;;  %v3393_v34 = vld [vmem:[%s4316_s1 + $0x238] sm:$0xff]  }
  0x5f   : > { %3002 = vmatpush3.bf16.msra.mxu0 %v3353_v30  ;;  %2989 = vmatprep.mubr.bf16.mxu0 %v3996_v1  ;;  %v4060_v62 = vcombine.low %v1498_v33, %v1501_v39  ;;  %v3367_v30 = vld [vmem:[%s4316_s1 + $0x1b8] sm:$0xff]  }
  0x60   : > { %2876 = vmatpush3.bf16.msra.mxu1 %v3354_v0  ;;  %3003 = vmatprep.subr.bf16.mxu0 %v3355_v37  ;;  %v3372_v0 = vld [vmem:[%s4316_s1 + $0xd0] sm:$0xff]  }
  0x61   : > { %2877 = vmatprep.subr.bf16.mxu1 %v3358_v46 }
  0x63   : > { %2862 = vmatmul.mubr.bf16.gmra.mrb[8].mxu1 %v4004_v21  ;;  %3004 = vmatpush3.bf16.msra.mxu0 %v3355_v37  ;;  %v3381_v37 = vld [vmem:[%s4316_s1 + $0xf0] sm:$0xff]  }
  0x64   : > { %2878 = vmatpush3.bf16.msra.mxu1 %v3358_v46  ;;  %2865 = vmatprep.mubr.bf16.mxu1 %v4011_v24  ;;  %v4119_v46 = vld [vmem:[%s3621_s4 + $0x6c] sm:$0xf]  ;;  %s4253_s4 = scalar_lea.hbm %s4318_s3, %s2657_s16 }
  0x65   : > { %2879 = vmatprep.subr.bf16.mxu1 %v3360_v61  ;;  %3005 = vmatprep.subr.bf16.mxu0 %v3359_v18  ;;  %v2592_v51 = vcombine.low %v4119_v46, %v4122_v12  ;;  %v1872_v27 = vshll.u32 %v4119_v46, 16  ;;  %v2626_v36 = vrot.slane %v4119_v46, 9 }
  0x66   : > { %2990 = vmatmul.mubr.bf16.gmra.mrb[8].mxu0 %v4030_v19 }
  0x67   : > { %3006 = vmatpush3.bf16.msra.mxu0 %v3359_v18  ;;  %2993 = vmatprep.mubr.bf16.mxu0 %v4037_v28  ;;  %v1874_v63 = vrot.slane %v1872_v27, 5 }
  0x68   : > { %2880 = vmatpush3.bf16.msra.mxu1 %v3360_v61  ;;  %3007 = vmatprep.subr.bf16.mxu0 %v3361_v38  ;;  %v3390_v61 = vld [vmem:[%s4316_s1 + $0x220] sm:$0xff]  }
  0x69   : > { %2881 = vmatprep.subr.bf16.mxu1 %v3364_v22 }
  0x6b   : > { %2866 = vmatmul.mubr.bf16.gmra.mrb[12].mxu1 %v4045_v42  ;;  %3008 = vmatpush3.bf16.msra.mxu0 %v3361_v38  ;;  %v1890_v38 = vrot.slane %v1888_v26, 5 }
  0x6c   : > { %2882 = vmatpush3.bf16.msra.mxu1 %v3364_v22  ;;  %2885 = vmatprep.mubr.bf16.mxu1 %v2484_v40  ;;  %v1882_v40 = vshrl.u32 %v4122_v12, 16  ;;  %v2080_v22 = vrot.slane %v228_v41, 5 }
  0x6d   : > { %2883 = vmatprep.subr.bf16.mxu1 %v3366_v17  ;;  %3009 = vmatprep.subr.bf16.mxu0 %v3365_v57 }
  0x6e   : > { %2994 = vmatmul.mubr.bf16.gmra.mrb[12].mxu0 %v4060_v62 }
  0x6f   : > { %3010 = vmatpush3.bf16.msra.mxu0 %v3365_v57  ;;  %3013 = vmatprep.mubr.bf16.mxu0 %v3923_v5 }
  0x70   : > { %2884 = vmatpush3.bf16.msra.mxu1 %v3366_v17  ;;  %3011 = vmatprep.subr.bf16.mxu0 %v3367_v30 }
  0x71   : > { %2901 = vmatprep.subr.bf16.mxu1 %v3368_v47 }
  0x73   : > { %2886 = vmatmul.mubr.bf16.vlgmr.msra.gmra.mrb[0].mxu1 %v3903_v56  ;;  %3012 = vmatpush3.bf16.msra.mxu0 %v3367_v30  ;;  %v3374_v56 = vld [vmem:[%s4316_s1 + $0xd8] sm:$0xff]  }
  0x74   : > { %2902 = vmatpush3.bf16.msra.mxu1 %v3368_v47  ;;  %2889 = vmatprep.mubr.bf16.mxu1 %v3940_v16 }
  0x75   : > { %2903 = vmatprep.subr.bf16.mxu1 %v3370_v50  ;;  %3029 = vmatprep.subr.bf16.mxu0 %v3369_v7 }
  0x76   : > { %3014 = vmatmul.mubr.bf16.vlgmr.msra.gmra.mrb[0].mxu0 %v3957_v45 }
  0x77   : > { %3030 = vmatpush3.bf16.msra.mxu0 %v3369_v7  ;;  %3017 = vmatprep.mubr.bf16.mxu0 %v3965_v49 }
  0x78   : > { %2904 = vmatpush3.bf16.msra.mxu1 %v3370_v50  ;;  %3031 = vmatprep.subr.bf16.mxu0 %v3371_v8 }
  0x79   : > { %2905 = vmatprep.subr.bf16.mxu1 %v3372_v0 }
  0x7b   : > { %2890 = vmatmul.mubr.bf16.gmra.mrb[4].mxu1 %v3947_v32  ;;  %3032 = vmatpush3.bf16.msra.mxu0 %v3371_v8 }
  0x7c   : > { %2906 = vmatpush3.bf16.msra.mxu1 %v3372_v0  ;;  %2893 = vmatprep.mubr.bf16.mxu1 %v3986_v58 }
  0x7d   : > { %2907 = vmatprep.subr.bf16.mxu1 %v3374_v56  ;;  %3033 = vmatprep.subr.bf16.mxu0 %v3373_v23 }
  0x7e   : > { %3018 = vmatmul.mubr.bf16.gmra.mrb[4].mxu0 %v4004_v21 }
  0x7f   : > { %3034 = vmatpush3.bf16.msra.mxu0 %v3373_v23  ;;  %3021 = vmatprep.mubr.bf16.mxu0 %v4011_v24 }
  0x80   : > { %2908 = vmatpush3.bf16.msra.mxu1 %v3374_v56  ;;  %3035 = vmatprep.subr.bf16.mxu0 %v3375_v14 }
  0x81   : > { %2909 = vmatprep.subr.bf16.mxu1 %v3376_v29 }
  0x83   : > { %2894 = vmatmul.mubr.bf16.gmra.mrb[8].mxu1 %v3996_v1  ;;  %3036 = vmatpush3.bf16.msra.mxu0 %v3375_v14 }
  0x84   : > { %2910 = vmatpush3.bf16.msra.mxu1 %v3376_v29  ;;  %2897 = vmatprep.mubr.bf16.mxu1 %v4030_v19 }
  0x85   : > { %2911 = vmatprep.subr.bf16.mxu1 %v3378_v52  ;;  %3037 = vmatprep.subr.bf16.mxu0 %v3377_v53 }
  0x86   : > { %3022 = vmatmul.mubr.bf16.gmra.mrb[8].mxu0 %v4045_v42 }
  0x87   : > { %3038 = vmatpush3.bf16.msra.mxu0 %v3377_v53  ;;  %3025 = vmatprep.mubr.bf16.mxu0 %v3895_v25 }
  0x88   : > { %2912 = vmatpush3.bf16.msra.mxu1 %v3378_v52  ;;  %3039 = vmatprep.subr.bf16.mxu0 %v3379_v54 }
  0x89   : > { %2913 = vmatprep.subr.bf16.mxu1 %v3381_v37 }
  0x8b   : > { %2898 = vmatmul.mubr.bf16.gmra.mrb[12].mxu1 %v4037_v28  ;;  %3040 = vmatpush3.bf16.msra.mxu0 %v3379_v54 }
  0x8c   : > { %2914 = vmatpush3.bf16.msra.mxu1 %v3381_v37  ;;  %2917 = vmatprep.mubr.bf16.mxu1 %v3918_v2  ;;  %v3387_v2 = vld [vmem:[%s4316_s1 + $0x208] sm:$0xff]  }
  0x8d   : > { %2915 = vmatprep.subr.bf16.mxu1 %v3384_v35  ;;  %3041 = vmatprep.subr.bf16.mxu0 %v3383_v13 }
  0x8e   : > { %3026 = vmatmul.mubr.bf16.gmra.mrb[12].mxu0 %v2592_v51 }
  0x8f   : > { %3042 = vmatpush3.bf16.msra.mxu0 %v3383_v13  ;;  %3045 = vmatprep.mubr.bf16.mxu0 %v3738_v43  ;;  %v1869_v43 = vshrl.u32 %v4119_v46, 16 }
  0x90   : > { %2916 = vmatpush3.bf16.msra.mxu1 %v3384_v35  ;;  %3043 = vmatprep.subr.bf16.mxu0 %v3385_v55 }
  0x91   : > { %3093 = vmatprep.subr.bf16.mxu1 %v3386_v6 }
  0x93   : > { %2918 = vmatmul.mubr.bf16.vlgmr.msra.gmra.mrb[0].mxu1 %v3923_v5  ;;  %3044 = vmatpush3.bf16.msra.mxu0 %v3385_v55  ;;  %v3389_v5 = vld [vmem:[%s4316_s1 + $0x218] sm:$0xff]  }
  0x94   : > { %3101 = vmatpush3.bf16.msra.mxu1 %v3386_v6  ;;  %2921 = vmatprep.mubr.bf16.mxu1 %v3957_v45  ;;  %v1878_v45 = vshll.u32 %v4122_v12, 16 }
  0x95   : > { %3094 = vmatprep.subr.bf16.mxu1 %v3387_v2  ;;  %3061 = vmatprep.subr.bf16.mxu0 %v3386_v6 }
  0x96   : > { %3046 = vmatmul.mubr.bf16.vlgmr.msra.gmra.mrb[0].mxu0 %v3766_v3  ;;  %v1871_v3 = vrot.slane %v1869_v43, 4  ;;  %v1880_v60 = vrot.slane %v1878_v45, 5 }
  0x97   : > { %3062 = vmatpush3.bf16.msra.mxu0 %v3386_v6  ;;  %3049 = vmatprep.mubr.bf16.mxu0 %v3799_v44  ;;  %v1884_v44 = vrot.slane %v1882_v40, 4  ;;  %v4211_v6 = vld [vmem:[%s4317_s2] ss:$0 sm:$0xff] }
  0x98   : > { %3102 = vmatpush3.bf16.msra.mxu1 %v3387_v2  ;;  %3063 = vmatprep.subr.bf16.mxu0 %v3387_v2 }
  0x99   : > { %3095 = vmatprep.subr.bf16.mxu1 %v3388_v9  ;;  %v1885_v18 = vor.u32 %v1884_v44, %v1880_v60 }
  0x9b   : > { %2922 = vmatmul.mubr.bf16.gmra.mrb[4].mxu1 %v3965_v49  ;;  %3064 = vmatpush3.bf16.msra.mxu0 %v3387_v2  ;;  %v3391_v49 = vld [vmem:[%s4316_s1 + $0x228] sm:$0xff]   ;;  %v1886_v15 = vrot.slane %v1885_v18, 4 }
  0x9c   : > { %3103 = vmatpush3.bf16.msra.mxu1 %v3388_v9  ;;  %2925 = vmatprep.mubr.bf16.mxu1 %v4004_v21  ;;  %v1875_v21 = vor.u32 %v1874_v63, %v1871_v3 }
  0x9d   : > { %3096 = vmatprep.subr.bf16.mxu1 %v3389_v5  ;;  %3065 = vmatprep.subr.bf16.mxu0 %v3388_v9  ;;  %v1891_v20 = vsel %vm3667_vm2, %v1886_v15, %v1890_v38 }
  0x9e   : > { %3050 = vmatmul.mubr.bf16.gmra.mrb[4].mxu0 %v3827_v11  ;;  %v1876_v11 = vrot.slane %v1875_v21, 4 }
  0x9f   : > { %3066 = vmatpush3.bf16.msra.mxu0 %v3388_v9  ;;  %3053 = vmatprep.mubr.bf16.mxu0 %v3853_v48  ;;  %v3392_v48 = vld [vmem:[%s4316_s1 + $0x230] sm:$0xff]  }
  0xa0   : > { %3104 = vmatpush3.bf16.msra.mxu1 %v3389_v5  ;;  %3067 = vmatprep.subr.bf16.mxu0 %v3389_v5 }
  0xa1   : > { %3097 = vmatprep.subr.bf16.mxu1 %v3390_v61 }
  0xa3   : > { %2926 = vmatmul.mubr.bf16.gmra.mrb[8].mxu1 %v4011_v24  ;;  %3068 = vmatpush3.bf16.msra.mxu0 %v3389_v5  ;;  %v1881_v24 = vsel %vm3667_vm2, %v1876_v11, %v1880_v60 }
  0xa4   : > { %3105 = vmatpush3.bf16.msra.mxu1 %v3390_v61  ;;  %2929 = vmatprep.mubr.bf16.mxu1 %v4045_v42  ;;  %v2617_v4 = vcombine.low %v1881_v24, %v1891_v20 }
  0xa5   : > { %3098 = vmatprep.subr.bf16.mxu1 %v3391_v49  ;;  %3069 = vmatprep.subr.bf16.mxu0 %v3390_v61 }
  0xa6   : > { %3054 = vmatmul.mubr.bf16.gmra.mrb[8].mxu0 %v3877_v31  ;;  %v2077_v31 = vrot.slane %v4122_v12, 5 }
  0xa7   : > { %3070 = vmatpush3.bf16.msra.mxu0 %v3390_v61  ;;  %3057 = vmatprep.mubr.bf16.mxu0 %v3906_v59 }
  0xa8   : > { %3106 = vmatpush3.bf16.msra.mxu1 %v3391_v49  ;;  %3071 = vmatprep.subr.bf16.mxu0 %v3391_v49  ;;  %v2079_v59 = vrot.slane %v2077_v31, 4 }
  0xa9   : > { %3099 = vmatprep.subr.bf16.mxu1 %v3392_v48 }
  0xab   : > { %2930 = vmatmul.mubr.bf16.gmra.mrb[12].mxu1 %v3895_v25  ;;  %3072 = vmatpush3.bf16.msra.mxu0 %v3391_v49  ;;  %v2078_v25 = vsel %vm3868_vm5, %v2626_v36, %v2077_v31 }
  0xac   : > { %3107 = vmatpush3.bf16.msra.mxu1 %v3392_v48  ;;  %3085 = vmatprep.mubr.bf16.mxu1 %v4030_v19  ;;  %v2081_v19 = vsel %vm3868_vm5, %v2079_v59, %v2080_v22 }
  0xad   : > { %3100 = vmatprep.subr.bf16.mxu1 %v3393_v34  ;;  %3073 = vmatprep.subr.bf16.mxu0 %v3392_v48  ;;  %v2643_v42 = vcombine.low %v2078_v25, %v2081_v19 }
  0xae   : > { %3058 = vmatmul.mubr.bf16.gmra.mrb[12].mxu0 %v2617_v4 }
  0xaf   : > { %3074 = vmatpush3.bf16.msra.mxu0 %v3392_v48  ;;  %3077 = vmatprep.mubr.bf16.mxu0 %v3940_v16 }
  0xb0   : > { %3108 = vmatpush3.bf16.msra.mxu1 %v3393_v34  ;;  %3075 = vmatprep.subr.bf16.mxu0 %v3393_v34 }
  0xb3   : > { %3086 = vmatmul.mubr.bf16.vlgmr.msra.gmra.mrb[16].mxu1 %v4037_v28  ;;  %3076 = vmatpush3.bf16.msra.mxu0 %v3393_v34 }
  0xb4   : > { %3089 = vmatprep.mubr.bf16.mxu1 %v4060_v62 }
  0xb6   : > { %3078 = vmatmul.mubr.bf16.vlgmr.msra.gmra.mrb[0].mxu0 %v3947_v32 }
  0xb7   : > { %3081 = vmatprep.mubr.bf16.mxu0 %v3986_v58 }
  0xbb   : > { %3090 = vmatmul.mubr.bf16.gmra.mrb[20].mxu1 %v2643_v42 }
  0xbe   : > { %3082 = vmatmul.mubr.bf16.gmra.mrb[4].mxu0 %v3996_v1 }
 0x166   : > { %v2919_v16 = vpop.f32.mrb[0].mxu1 }
 0x167   : > { %v1209_v33 = vpop.f32.mrb[1].mxu1 }
 0x168   : > { %v2920_v28 = vpop.f32.mrb[2].mxu1 }
 0x169   : > { %v1212_v39 = vpop.f32.mrb[3].mxu1 }
 0x16e   : > { %v4197_v17 = vpop.f32.mrb[4].mxu1 }
 0x16f   : > { %v4199_v57 = vpop.f32.mrb[5].mxu1 }
 0x170   : > { %v4201_v62 = vpop.f32.mrb[6].mxu1 }
 0x171   : > { %v4203_v10 = vpop.f32.mrb[7].mxu1 }
 0x176   : > { %v2927_v30 = vpop.f32.mrb[8].mxu1 }
 0x177   : > { %v1241_v32 = vpop.f32.mrb[9].mxu1 }
 0x178   : > { %v2928_v47 = vpop.f32.mrb[10].mxu1 }
 0x179   : > { %v1244_v58 = vpop.f32.mrb[11].mxu1  ;;  %v3055_v50 = vpop.f32.mrb[8].mxu0 }
 0x17a   : > { %v3117_v7 = vadd.f32 %v3055_v50, %v2927_v30  ;;  %v2027_v1 = vpop.f32.mrb[9].mxu0 }
 0x17b   : > { %v3119_v8 = vadd.f32 %v2027_v1, %v1241_v32  ;;  %v3056_v0 = vpop.f32.mrb[10].mxu0 }
 0x17c   : > { %v3121_v56 = vadd.f32 %v3056_v0, %v2928_v47  ;;  %v2030_v23 = vpop.f32.mrb[11].mxu0 }
 0x17d   : > { %v3123_v29 = vadd.f32 %v2030_v23, %v1244_v58 }
 0x17e   : > { %v2931_v14 = vpop.f32.mrb[12].mxu1 }
 0x17f   : > { %v1257_v52 = vpop.f32.mrb[13].mxu1 }
 0x180   : > { %v2932_v53 = vpop.f32.mrb[14].mxu1 }
 0x181   : > { %v1260_v54 = vpop.f32.mrb[15].mxu1  ;;  %v3059_v37 = vpop.f32.mrb[12].mxu0 }
 0x182   : > { %v3125_v46 = vadd.f32 %v3059_v37, %v2931_v14  ;;  %v2043_v12 = vpop.f32.mrb[13].mxu0 }
 0x183   : > { %v3127_v35 = vadd.f32 %v2043_v12, %v1257_v52  ;;  %v3060_v13 = vpop.f32.mrb[14].mxu0 }
 0x184   : > { %v3129_v51 = vadd.f32 %v3060_v13, %v2932_v53  ;;  %v2046_v55 = vpop.f32.mrb[15].mxu0 }
 0x185   : > { %v3131_v9 = vadd.f32 %v2046_v55, %v1260_v54 }
 0x186   : > { %v3087_v2 = vpop.f32.mrb[16].mxu1 }
 0x187   : > { %v3118_v43 = vadd.f32 %v3117_v7, %v3087_v2  ;;  %v2217_v27 = vpop.f32.mrb[17].mxu1 }
 0x188   : > { %v3120_v40 = vadd.f32 %v3119_v8, %v2217_v27  ;;  %v3088_v5 = vpop.f32.mrb[18].mxu1 }
 0x189   : > { %v2281_v45 = vadd.f32 %v3118_v43, %v4211_v6  ;;  %v3122_v3 = vadd.f32 %v3121_v56, %v3088_v5  ;;  %v2220_v63 = vpop.f32.mrb[19].mxu1  ;;  %v3079_v61 = vpop.f32.mrb[0].mxu0 }
 0x18a   : > { %v2279_v60 = vadd.f32 %v3120_v40, %v4211_v6  ;;  %v3124_v44 = vadd.f32 %v3123_v29, %v2220_v63  ;;  %v3109_v49 = vadd.f32 %v3079_v61, %v2919_v16  ;;  %v2185_v21 = vpop.f32.mrb[1].mxu0 }
 0x18b   : > { %2297 = vst [vmem:[%s4215_s27 + $0x50] sm:$0xff] %v2281_v45  ;;  %v2282_v41 = vadd.f32 %v3122_v3, %v4211_v6  ;;  %v3110_v26 = vadd.f32 %v2185_v21, %v1209_v33  ;;  %v3080_v11 = vpop.f32.mrb[2].mxu0 }
 0x18c   : > { %2295 = vst [vmem:[%s4215_s27 + $0x40] sm:$0xff] %v2279_v60  ;;  %v2280_v18 = vadd.f32 %v3124_v44, %v4211_v6  ;;  %v2273_v15 = vadd.f32 %v3109_v49, %v4211_v6  ;;  %v3111_v38 = vadd.f32 %v3080_v11, %v2920_v28  ;;  %v2188_v48 = vpop.f32.mrb[3].mxu0 }
 0x18d   : > { %2298 = vst [vmem:[%s4215_s27 + $0x58] sm:$0xff] %v2282_v41  ;;  %v2271_v20 = vadd.f32 %v3110_v26, %v4211_v6  ;;  %v3112_v34 = vadd.f32 %v2188_v48, %v1212_v39 }
 0x18e   : > { %2296 = vst [vmem:[%s4215_s27 + $0x48] sm:$0xff] %v2280_v18  ;;  %v3091_v24 = vpop.f32.mrb[20].mxu1  ;;  %2289 = vst [vmem:[%s4215_s27 + $0x10] sm:$0xff] %v2273_v15  ;;  %v2274_v36 = vadd.f32 %v3111_v38, %v4211_v6 }
 0x18f   : > { %v3126_v4 = vadd.f32 %v3125_v46, %v3091_v24  ;;  %v2233_v31 = vpop.f32.mrb[21].mxu1  ;;  %2287 = vst [vmem:[%s4215_s27] sm:$0xff] %v2271_v20  ;;  %v2272_v25 = vadd.f32 %v3112_v34, %v4211_v6 }
 0x190   : > { %v3128_v59 = vadd.f32 %v3127_v35, %v2233_v31  ;;  %v3092_v22 = vpop.f32.mrb[22].mxu1  ;;  %2290 = vst [vmem:[%s4215_s27 + $0x18] sm:$0xff] %v2274_v36 }
 0x191   : > { %v2285_v19 = vadd.f32 %v3126_v4, %v4211_v6  ;;  %v3130_v42 = vadd.f32 %v3129_v51, %v3092_v22  ;;  %v2236_v16 = vpop.f32.mrb[23].mxu1  ;;  %2288 = vst [vmem:[%s4215_s27 + $0x8] sm:$0xff] %v2272_v25  ;;  %v3083_v39 = vpop.f32.mrb[4].mxu0 }
 0x192   : > { %v2283_v33 = vadd.f32 %v3128_v59, %v4211_v6  ;;  %v3132_v28 = vadd.f32 %v3131_v9, %v2236_v16  ;;  %v3113_v32 = vadd.f32 %v3083_v39, %v4197_v17  ;;  %v2201_v47 = vpop.f32.mrb[5].mxu0 }
 0x193   : > { %2301 = vst [vmem:[%s4215_s27 + $0x70] sm:$0xff] %v2285_v19  ;;  %v2286_v30 = vadd.f32 %v3130_v42, %v4211_v6  ;;  %v3114_v50 = vadd.f32 %v2201_v47, %v4199_v57  ;;  %v3084_v7 = vpop.f32.mrb[6].mxu0 }
 0x194   : > { %2299 = vst [vmem:[%s4215_s27 + $0x60] sm:$0xff] %v2283_v33  ;;  %v2284_v58 = vadd.f32 %v3132_v28, %v4211_v6  ;;  %v2277_v1 = vadd.f32 %v3113_v32, %v4211_v6  ;;  %v3115_v8 = vadd.f32 %v3084_v7, %v4201_v62  ;;  %v2204_v17 = vpop.f32.mrb[7].mxu0 }
 0x195   : > { %2302 = vst [vmem:[%s4215_s27 + $0x78] sm:$0xff] %v2286_v30  ;;  %v2275_v0 = vadd.f32 %v3114_v50, %v4211_v6  ;;  %v3116_v56 = vadd.f32 %v2204_v17, %v4203_v10 }
 0x196   : > { %2300 = vst [vmem:[%s4215_s27 + $0x68] sm:$0xff] %v2284_v58  ;;  %2293 = vst [vmem:[%s4215_s27 + $0x30] sm:$0xff] %v2277_v1  ;;  %v2278_v57 = vadd.f32 %v3115_v8, %v4211_v6 }
 0x197   : > { %2291 = vst [vmem:[%s4215_s27 + $0x20] sm:$0xff] %v2275_v0  ;;  %v2276_v62 = vadd.f32 %v3116_v56, %v4211_v6 }
 0x198   : > { %2294 = vst [vmem:[%s4215_s27 + $0x38] sm:$0xff] %v2278_v57 }
 0x199   : > { %2292 = vst [vmem:[%s4215_s27 + $0x28] sm:$0xff] %v2276_v62 }
 0x19a   : > { %3407 = shalt.err (!%p3404_p7)
}
 0x19b   : > { %s3408_s10 = scalar_lea.hbm %s4253_s4, 2048  ;;  %s3412_s28 = scalar_lea.hbm %s4318_s3, 8192 }
 0x19c   : > { %p3409_p9 = scmp.ne.s32.totalorder %s4253_s4, %s3408_s10  ;;  %p3413_p12 = scmp.lt.u32.totalorder %s4253_s4, %s4318_s3 }
 0x19d   : > { %p3414_p13 = scmp.lt.u32.totalorder %s3412_s28, %s3408_s10  ;;  %p3416_p1 = scmp.lt.u32.totalorder %s3408_s10, %s4253_s4 }
 0x19e   : > { %p3410_p10 = pnand %p3409_p9, %p3564_p3 }
 0x19f   : > { %p3415_p0 = por %p3414_p13, %p3413_p12 }
 0x1a0   : > { %p3411_p11 = pneg %p3410_p10 }
 0x1a1   : > { %p3417_p2 = por %p3416_p1, %p3415_p0 }
 0x1a3   : > { %p3418_p4 = pnand %p3417_p2, %p3411_p11 }
 0x1a5   : > { %3421 = shalt.err (!%p3418_p4)
}
 0x1a6   : > { %s3491_s16 = smov 128   ;;  %s3492_s7 = smov 8  }
 0x1a7   : > { %3239 = dma.vmem_to_hbm [thread:$0]  (%p3564_p3), %s4255_s5, 2048, %s4253_s4, %s4263_s8, %s3491_s16, %s3491_s16, %s3492_s7  }
 0x1a8 PF: > { %p3245_p5 = scmp.ge.s32.totalorder %s3488_s19, 2  ;;  %s2335_s6 = sand.u32 1, %s3460_s12  }
 0x1a9   : > { %s2336_s9 = scalar_lea.sflag [#allocation3], %s2335_s6 }
 0x1aa   : > { %p3242_p6 = pnand %p3245_p5, %p3573_p8 }
 0x1ac   : > { %3455 = dma.done.wait (!%p3242_p6), %s2336_s9, 2048  }
 0x1ad   : > { %3457 = vsyncadd (!%p3242_p6), %s2336_s9, 4294965248  ;;  %s16_s19 = sadd.s32 1, %s3488_s19   ;;  %s4325_s12 = smov %s3464_s13 }
 0x1ae   : > { %p13_p7 = scmp.ge.s32.totalorder %s16_s19, 6   ;;  %s4326_s13 = smov %s3468_s14 }
 0x1af   : > { %s4327_s14 = smov %s3582_s30  ;;  %s4328_s15 = smov %s3480_s17 }
 0x1b0   : > { %s4329_s16 = smov %s3484_s18  ;;  %s4330_s17 = smov %s4333_s22 }
 0x1b1   : > { %s4331_s18 = smov %s4337_s23  ;;  %15 = sbr.rel (!%p13_p7) target bundleno = 5 (0x5), region = 75 }
 0x1b8   :  { %2341 = vsyncpa [#allocation3], 1 }
 0x1b9   :  { %2343 = vsyncpa [#allocation3 + $0x1], 1 }

</bundles_post_ra>
